<compile_context>
chip_gen: v7x
topology: tpu7x:2x2x1
jax: 0.10.0
libtpu: 0.0.40
codegen_flags: <defaults>
</compile_context>

<pallas_src>
import functools

import jax
import jax.numpy as jnp
from jax.experimental import pallas as pl
from jax.experimental.pallas import tpu as pltpu

INPUT_DIM = 784
D_PAD = 896          # 7 * 128, lane-dense padded feature dim
H_DIM = 64
H_DIM2 = 16
Z_DIM = 2
HEAD_DIM = 2 * Z_DIM  # fused mu | log_sigma head


def bpnet_kernel(x_ref, w1_ref, b1_ref, w2_ref, b2_ref,
                 wh_ref, bh_ref, eps_ref, out_ref):
    # --- encode: relu(Linear(784->64)) -> relu(Linear(64->16)) ------------
    # bf16 operands on the MXU, f32 accumulation; elementwise math in f32.
    h1 = jnp.dot(x_ref[...], w1_ref[...],
                 preferred_element_type=jnp.float32) + b1_ref[...]
    h1 = jnp.maximum(h1, 0.0)

    h2 = jnp.dot(h1.astype(jnp.bfloat16), w2_ref[...],
                 preferred_element_type=jnp.float32) + b2_ref[...]
    h2 = jnp.maximum(h2, 0.0)

    # --- fused heads: one (16 -> 4) matmul, slice mu / logvar -------------
    head = jnp.dot(h2.astype(jnp.bfloat16), wh_ref[...],
                   preferred_element_type=jnp.float32) + bh_ref[...]
    mu = head[:, :Z_DIM]
    logvar = head[:, Z_DIM:HEAD_DIM]
    std = jnp.exp(logvar)

    # --- reparameterize ---------------------------------------------------
    out_ref[...] = eps_ref[...] * std + mu


@functools.partial(jax.jit, static_argnames=("block_b",))
def bpnet_forward(x, params, eps, block_b=512):
    assert block_b % 8 == 0, "block_b must be a multiple of 8 (sublane tiling)"
    B, D = x.shape
    assert D == INPUT_DIM
    w1, b1, w2, b2, wmu, bmu, wls, bls = params

    # ---- pack / pad parameters (traced inside jit; cheap one-time ops) ----
    # Pad W1 rows 784 -> 896 with zeros, cast matmul weights to bf16.
    w1p = jnp.pad(w1, ((0, D_PAD - INPUT_DIM), (0, 0))).astype(jnp.bfloat16)
    w2b = w2.astype(jnp.bfloat16)
    # Fuse the two heads: (16, 2) | (16, 2) -> (16, 4), biases (1, 4).
    wh = jnp.concatenate([wmu, wls], axis=1).astype(jnp.bfloat16)
    bh = jnp.concatenate([bmu, bls], axis=1).astype(jnp.float32)
    b1f = b1.astype(jnp.float32)
    b2f = b2.astype(jnp.float32)

    # ---- pad batch + features of x / eps ----------------------------------
    n_blocks = pl.cdiv(B, block_b)
    B_pad = n_blocks * block_b
    x_p = jnp.pad(x, ((0, B_pad - B), (0, D_PAD - INPUT_DIM))).astype(jnp.bfloat16)
    eps_p = jnp.pad(eps, ((0, B_pad - B), (0, 0))).astype(jnp.float32)

    grid = (n_blocks,)

    # Weights / biases are replicated (constant block index -> stay resident
    # in VMEM across the batch grid); x / eps / out are tiled over batch.
    full = lambda a: pl.BlockSpec(a.shape, lambda i: (0,) * a.ndim)

    # ---- cost estimate + (only if needed) raised VMEM limit ---------------
    flops = 2 * B_pad * (D_PAD * H_DIM + H_DIM * H_DIM2 + H_DIM2 * HEAD_DIM)
    weight_bytes = (w1p.size + w2b.size + wh.size) * 2 + (b1f.size + b2f.size + bh.size) * 4
    bytes_accessed = B_pad * D_PAD * 2 + weight_bytes + B_pad * Z_DIM * 4 * 2
    cost = pl.CostEstimate(flops=flops,
                           transcendentals=B_pad * Z_DIM,
                           bytes_accessed=bytes_accessed)

    # Double-buffered x/eps/out tiles + resident weights + slack.
    work_bytes = (2 * block_b * D_PAD * 2          # x tiles (bf16)
                  + 4 * block_b * Z_DIM * 4        # eps + out tiles (f32)
                  + weight_bytes
                  + (2 << 20))                     # scratch slack
    cp_kwargs = dict(dimension_semantics=("parallel",))
    if work_bytes > (12 << 20):
        # Only raise the scoped-VMEM limit when a very large block_b needs it
        # (v5e default scoped limit is 16 MiB; keep well under v7x's 64 MiB).
        cp_kwargs["vmem_limit_bytes"] = min(work_bytes + (4 << 20), 48 << 20)

    out = pl.pallas_call(
        bpnet_kernel,
        out_shape=jax.ShapeDtypeStruct((B_pad, Z_DIM), jnp.float32),
        grid_spec=pltpu.PrefetchScalarGridSpec(
            num_scalar_prefetch=0,
            grid=grid,
            in_specs=[
                pl.BlockSpec((block_b, D_PAD), lambda i: (i, 0)),   # x (bf16)
                full(w1p), full(b1f),                               # Linear 896->64
                full(w2b), full(b2f),                               # Linear 64->16
                full(wh), full(bh),                                 # fused 16->4 head
                pl.BlockSpec((block_b, Z_DIM), lambda i: (i, 0)),   # eps (f32)
            ],
            out_specs=pl.BlockSpec((block_b, Z_DIM), lambda i: (i, 0)),
        ),
        compiler_params=pltpu.CompilerParams(**cp_kwargs),
        cost_estimate=cost,
    )(x_p, w1p, b1f, w2b, b2f, wh, bh, eps_p)

    return out[:B]


def init_params(key):
    """Deterministic synthetic parameters (PyTorch Linear shapes, stored transposed)."""
    ks = jax.random.split(key, 8)

    def lin(kw, kb, fan_in, fan_out):
        scale = 1.0 / jnp.sqrt(jnp.float32(fan_in))
        w = jax.random.uniform(kw, (fan_in, fan_out), jnp.float32, -scale, scale)
        b = jax.random.uniform(kb, (1, fan_out), jnp.float32, -scale, scale)
        return w, b

    w1, b1 = lin(ks[0], ks[1], INPUT_DIM, H_DIM)
    w2, b2 = lin(ks[2], ks[3], H_DIM, H_DIM2)
    wmu, bmu = lin(ks[4], ks[5], H_DIM2, Z_DIM)
    wls, bls = lin(ks[6], ks[7], H_DIM2, Z_DIM)
    return (w1, b1, w2, b2, wmu, bmu, wls, bls)


def reference_forward(x, params, eps):
    """Pure-JAX reference emulating the kernel's bf16-operand / f32-accum matmuls."""
    w1, b1, w2, b2, wmu, bmu, wls, bls = params
    bf = lambda a: a.astype(jnp.bfloat16).astype(jnp.float32)
    h1 = jnp.maximum(bf(x) @ bf(w1) + b1, 0.0)
    h2 = jnp.maximum(bf(h1) @ bf(w2) + b2, 0.0)
    mu = bf(h2) @ bf(wmu) + bmu
    std = jnp.exp(bf(h2) @ bf(wls) + bls)
    return eps * std + mu


if __name__ == "__main__":
    key = jax.random.PRNGKey(0)
    k_param, k_x, k_eps = jax.random.split(key, 3)

    # Small demo shapes; block_b=32 keeps grid length >= 2 (megacore-friendly).
    B = 64
    params = init_params(k_param)
    x = jax.random.normal(k_x, (B, INPUT_DIM), jnp.float32)
    # eps ~ randn_like(std); sampled in plain JAX for determinism, consumed in-kernel.
    eps = jax.random.normal(k_eps, (B, Z_DIM), jnp.float32)

    out = bpnet_forward(x, params, eps, block_b=32)
    out = jax.block_until_ready(out)

    ref = reference_forward(x, params, eps)
    assert out.shape == (B, Z_DIM)
    assert jnp.allclose(out, ref, atol=1e-3, rtol=1e-3), "mismatch vs JAX reference"

    print("KERNEL_OK")
</pallas_src>

<mosaic_0001>
module attributes {stable_mosaic.version = 11 : i64} {
  func.func @bpnet_kernel(%arg0: i32, %arg1: memref<32x896xbf16, #tpu.memory_space<vmem>>, %arg2: memref<896x64xbf16, #tpu.memory_space<vmem>>, %arg3: memref<1x64xf32, #tpu.memory_space<vmem>>, %arg4: memref<64x16xbf16, #tpu.memory_space<vmem>>, %arg5: memref<1x16xf32, #tpu.memory_space<vmem>>, %arg6: memref<16x4xbf16, #tpu.memory_space<vmem>>, %arg7: memref<1x4xf32, #tpu.memory_space<vmem>>, %arg8: memref<32x2xf32, #tpu.memory_space<vmem>>, %arg9: memref<32x2xf32, #tpu.memory_space<vmem>>) attributes {dimension_semantics = [#tpu.dimension_semantics<parallel>], iteration_bounds = array<i64: 2>, scalar_prefetch = 0 : i64, scratch_operands = 0 : i64, tpu.core_type = #tpu.core_type<tc>, window_params = [{transform_indices = @transform_0, window_bounds = array<i64: 32, 896>}, {pipeline_mode = #tpu.pipeline_mode<synchronous>, transform_indices = @transform_1, window_bounds = array<i64: 896, 64>}, {pipeline_mode = #tpu.pipeline_mode<synchronous>, transform_indices = @transform_2, window_bounds = array<i64: 1, 64>}, {pipeline_mode = #tpu.pipeline_mode<synchronous>, transform_indices = @transform_3, window_bounds = array<i64: 64, 16>}, {pipeline_mode = #tpu.pipeline_mode<synchronous>, transform_indices = @transform_4, window_bounds = array<i64: 1, 16>}, {pipeline_mode = #tpu.pipeline_mode<synchronous>, transform_indices = @transform_5, window_bounds = array<i64: 16, 4>}, {pipeline_mode = #tpu.pipeline_mode<synchronous>, transform_indices = @transform_6, window_bounds = array<i64: 1, 4>}, {transform_indices = @transform_7, window_bounds = array<i64: 32, 2>}, {transform_indices = @transform_8, window_bounds = array<i64: 32, 2>}]} {
    %c0 = arith.constant 0 : index
    %c0_0 = arith.constant 0 : index
    %0 = vector.load %arg1[%c0, %c0_0] : memref<32x896xbf16, #tpu.memory_space<vmem>>, vector<32x896xbf16>
    %c0_1 = arith.constant 0 : index
    %c0_2 = arith.constant 0 : index
    %1 = vector.load %arg2[%c0_1, %c0_2] : memref<896x64xbf16, #tpu.memory_space<vmem>>, vector<896x64xbf16>
    %cst = arith.constant dense<0.000000e+00> : vector<32x64xf32>
    %2 = tpu.matmul %0, %1, %cst {dimension_numbers = #tpu.dot_dimension_numbers<[1], [0], [0], [1], [0, 0, 1, 1], [], []>} : vector<32x896xbf16>, vector<896x64xbf16>, vector<32x64xf32> -> vector<32x64xf32>
    %c0_3 = arith.constant 0 : index
    %c0_4 = arith.constant 0 : index
    %3 = vector.load %arg3[%c0_3, %c0_4] : memref<1x64xf32, #tpu.memory_space<vmem>>, vector<1x64xf32>
    %4 = vector.broadcast %3 : vector<1x64xf32> to vector<32x64xf32>
    %5 = arith.addf %2, %4 : vector<32x64xf32>
    %cst_5 = arith.constant 0.000000e+00 : f32
    %6 = vector.broadcast %cst_5 : f32 to vector<32x64xf32>
    %7 = arith.maximumf %5, %6 : vector<32x64xf32>
    %8 = arith.truncf %7 : vector<32x64xf32> to vector<32x64xbf16>
    %c0_6 = arith.constant 0 : index
    %c0_7 = arith.constant 0 : index
    %9 = vector.load %arg4[%c0_6, %c0_7] : memref<64x16xbf16, #tpu.memory_space<vmem>>, vector<64x16xbf16>
    %cst_8 = arith.constant dense<0.000000e+00> : vector<32x16xf32>
    %10 = tpu.matmul %8, %9, %cst_8 {dimension_numbers = #tpu.dot_dimension_numbers<[1], [0], [0], [1], [0, 0, 1, 1], [], []>} : vector<32x64xbf16>, vector<64x16xbf16>, vector<32x16xf32> -> vector<32x16xf32>
    %c0_9 = arith.constant 0 : index
    %c0_10 = arith.constant 0 : index
    %11 = vector.load %arg5[%c0_9, %c0_10] : memref<1x16xf32, #tpu.memory_space<vmem>>, vector<1x16xf32>
    %12 = vector.broadcast %11 : vector<1x16xf32> to vector<32x16xf32>
    %13 = arith.addf %10, %12 : vector<32x16xf32>
    %cst_11 = arith.constant 0.000000e+00 : f32
    %14 = vector.broadcast %cst_11 : f32 to vector<32x16xf32>
    %15 = arith.maximumf %13, %14 : vector<32x16xf32>
    %16 = arith.truncf %15 : vector<32x16xf32> to vector<32x16xbf16>
    %c0_12 = arith.constant 0 : index
    %c0_13 = arith.constant 0 : index
    %17 = vector.load %arg6[%c0_12, %c0_13] : memref<16x4xbf16, #tpu.memory_space<vmem>>, vector<16x4xbf16>
    %cst_14 = arith.constant dense<0.000000e+00> : vector<32x4xf32>
    %18 = tpu.matmul %16, %17, %cst_14 {dimension_numbers = #tpu.dot_dimension_numbers<[1], [0], [0], [1], [0, 0, 1, 1], [], []>} : vector<32x16xbf16>, vector<16x4xbf16>, vector<32x4xf32> -> vector<32x4xf32>
    %c0_15 = arith.constant 0 : index
    %c0_16 = arith.constant 0 : index
    %19 = vector.load %arg7[%c0_15, %c0_16] : memref<1x4xf32, #tpu.memory_space<vmem>>, vector<1x4xf32>
    %20 = vector.broadcast %19 : vector<1x4xf32> to vector<32x4xf32>
    %21 = arith.addf %18, %20 : vector<32x4xf32>
    %22 = vector.extract_strided_slice %21 {offsets = [0, 0], sizes = [32, 2], strides = [1, 1]} : vector<32x4xf32> to vector<32x2xf32>
    %23 = vector.extract_strided_slice %21 {offsets = [0, 2], sizes = [32, 2], strides = [1, 1]} : vector<32x4xf32> to vector<32x2xf32>
    %24 = math.exp %23 : vector<32x2xf32>
    %c0_17 = arith.constant 0 : index
    %c0_18 = arith.constant 0 : index
    %25 = vector.load %arg8[%c0_17, %c0_18] : memref<32x2xf32, #tpu.memory_space<vmem>>, vector<32x2xf32>
    %26 = arith.mulf %25, %24 : vector<32x2xf32>
    %27 = arith.addf %26, %22 : vector<32x2xf32>
    %c0_19 = arith.constant 0 : index
    %c0_20 = arith.constant 0 : index
    %28 = vector.load %arg9[%c0_19, %c0_20] : memref<32x2xf32, #tpu.memory_space<vmem>>, vector<32x2xf32>
    tpu.vector_store %arg9[%c0_19, %c0_20], %27 {strides = array<i32>} : memref<32x2xf32, #tpu.memory_space<vmem>>, vector<32x2xf32>,
    return
  }
  func.func @transform_0(%arg0: i32) -> (i32, i32) {
    %c0_i32 = arith.constant 0 : i32
    %c0_i32_0 = arith.constant 0 : i32
    return %arg0, %c0_i32 : i32, i32
  }
  func.func @transform_1(%arg0: i32) -> (i32, i32) {
    %c0_i32 = arith.constant 0 : i32
    %c0_i32_0 = arith.constant 0 : i32
    %c0_i32_1 = arith.constant 0 : i32
    return %c0_i32, %c0_i32_0 : i32, i32
  }
  func.func @transform_2(%arg0: i32) -> (i32, i32) {
    %c0_i32 = arith.constant 0 : i32
    %c0_i32_0 = arith.constant 0 : i32
    %c0_i32_1 = arith.constant 0 : i32
    return %c0_i32, %c0_i32_0 : i32, i32
  }
  func.func @transform_3(%arg0: i32) -> (i32, i32) {
    %c0_i32 = arith.constant 0 : i32
    %c0_i32_0 = arith.constant 0 : i32
    %c0_i32_1 = arith.constant 0 : i32
    return %c0_i32, %c0_i32_0 : i32, i32
  }
  func.func @transform_4(%arg0: i32) -> (i32, i32) {
    %c0_i32 = arith.constant 0 : i32
    %c0_i32_0 = arith.constant 0 : i32
    %c0_i32_1 = arith.constant 0 : i32
    return %c0_i32, %c0_i32_0 : i32, i32
  }
  func.func @transform_5(%arg0: i32) -> (i32, i32) {
    %c0_i32 = arith.constant 0 : i32
    %c0_i32_0 = arith.constant 0 : i32
    %c0_i32_1 = arith.constant 0 : i32
    return %c0_i32, %c0_i32_0 : i32, i32
  }
  func.func @transform_6(%arg0: i32) -> (i32, i32) {
    %c0_i32 = arith.constant 0 : i32
    %c0_i32_0 = arith.constant 0 : i32
    %c0_i32_1 = arith.constant 0 : i32
    return %c0_i32, %c0_i32_0 : i32, i32
  }
  func.func @transform_7(%arg0: i32) -> (i32, i32) {
    %c0_i32 = arith.constant 0 : i32
    %c0_i32_0 = arith.constant 0 : i32
    return %arg0, %c0_i32 : i32, i32
  }
  func.func @transform_8(%arg0: i32) -> (i32, i32) {
    %c0_i32 = arith.constant 0 : i32
    %c0_i32_0 = arith.constant 0 : i32
    return %arg0, %c0_i32 : i32, i32
  }
}

</mosaic_0001>

<bundles_post_ra>
// kernel: bpnet_forward.1
= control target key start
LH: loop header
LB: loop body
LE: loop exit
PB: predicated region body
PF: predicated region fallthrough
CT: control target
= control target key end

     0   :  { %s1750_s27 = smov 0   ;;  %s1984_s0 = inlined_call_operand.vmem [shape: bf16[64,896], index: 0, kind: input, shape index: {}]   ;;  %s1985_s1 = inlined_call_operand.vmem [shape: bf16[896,64], index: 1, kind: input, shape index: {}]   ;;  %s1986_s2 = inlined_call_operand.vmem [shape: f32[1,64], index: 2, kind: input, shape index: {}]   ;;  %s1987_s3 = inlined_call_operand.vmem [shape: bf16[64,16], index: 3, kind: input, shape index: {}]   ;;  %s1988_s4 = inlined_call_operand.vmem [shape: f32[1,16], index: 4, kind: input, shape index: {}]   ;;  %s1989_s5 = inlined_call_operand.vmem [shape: bf16[16,4], index: 5, kind: input, shape index: {}]   ;;  %s1990_s6 = inlined_call_operand.vmem [shape: f32[1,4], index: 6, kind: input, shape index: {}]   ;;  %s1991_s7 = inlined_call_operand.vmem [shape: f32[64,2], index: 7, kind: input, shape index: {}]   ;;  %s1992_s8 = inlined_call_operand.vmem [shape: f32[64,2], index: 8, kind: output, shape index: {}]  }
   0x1 LB: > { %s1361_s28 = sadd.s32 4294967295, %s1702_s27   ;;  %p1365_p0 = scmp.ge.s32.totalorder %s1702_s27, 1  ;;  %s1702_s27 = sphi %s1750_s27, %s18_s27  }
   0x2   : > { %p275_p1 = scmp.lt.s32.totalorder %s1702_s27, 3 }
   0x4   : > { %p276_p2 = pnand %p1365_p0, %p275_p1 }
   0x5   : > { %v1607_v0 = vld [vmem:[%s1985_s1 + $0x40] sm:$0xff] (!%p276_p2)   ;;  %v1611_v4 = vld [vmem:[%s1985_s1 + $0x48] sm:$0xff] (!%p276_p2)   ;;  %v1615_v8 = vld [vmem:[%s1985_s1 + $0x50] sm:$0xff] (!%p276_p2)   ;;  %s1366_s15 = sshll.u32 (!%p276_p2), %s1361_s28, 2  ;;  %vm1119_vm0 = vcmask (!%p276_p2), 523264   ;;  %vm1196_vm1 = vcmask (!%p276_p2), 130048  }
   0x6   : > { %279 = sbr.rel (%p276_p2) target bundleno = 877 (0x36d), region = 52  ;;  %v1608_v1 = vld [vmem:[%s1985_s1] sm:$0xff] (!%p276_p2)   ;;  %1456 = vmatprep.subr.bf16.mxu0 (!%p276_p2), %v1607_v0  ;;  %v1612_v5 = vld [vmem:[%s1985_s1 + $0x8] sm:$0xff] (!%p276_p2)   ;;  %v1616_v9 = vld [vmem:[%s1985_s1 + $0x10] sm:$0xff] (!%p276_p2)   ;;  %p316_p3 = scmp.lt.s32.totalorder (!%p276_p2), %s1366_s15, 7  ;;  %vm1288_vm2 = vcmask (!%p276_p2), 15360  }
   0x7   : > { %v1609_v2 = vld [vmem:[%s1985_s1 + $0xc0] sm:$0xff] (!%p276_p2)   ;;  %1457 = vmatpush3.bf16.msra.mxu0 (!%p276_p2), %v1608_v1  ;;  %v1613_v6 = vld [vmem:[%s1985_s1 + $0xc8] sm:$0xff] (!%p276_p2)   ;;  %v1617_v10 = vld [vmem:[%s1985_s1 + $0xd0] sm:$0xff] (!%p276_p2)   ;;  %s1704_s22 = smov (!%p276_p2), 126  }
   0x8   : > { %v1610_v3 = vld [vmem:[%s1985_s1 + $0x80] sm:$0xff] (!%p276_p2)   ;;  %1484 = vmatprep.subr.bf16.mxu1 (!%p276_p2), %v1609_v2  ;;  %1458 = vmatprep.subr.bf16.mxu0 (!%p276_p2), %v1611_v4  ;;  %v1614_v7 = vld [vmem:[%s1985_s1 + $0x88] sm:$0xff] (!%p276_p2)   ;;  %v1618_v11 = vld [vmem:[%s1985_s1 + $0x90] sm:$0xff] (!%p276_p2)  }
   0x9   : > { %1485 = vmatpush3.bf16.msra.mxu1 (!%p276_p2), %v1610_v3  ;;  %v1619_v12 = vld [vmem:[%s1985_s1 + $0x58] sm:$0xff] (!%p276_p2)   ;;  %v1623_v16 = vld [vmem:[%s1985_s1 + $0x60] sm:$0xff] (!%p276_p2)   ;;  %v1627_v20 = vld [vmem:[%s1985_s1 + $0x68] sm:$0xff] (!%p276_p2)  }
   0xa   : > { %1486 = vmatprep.subr.bf16.mxu1 (!%p276_p2), %v1613_v6  ;;  %v1620_v13 = vld [vmem:[%s1985_s1 + $0x18] sm:$0xff] (!%p276_p2)   ;;  %v1624_v17 = vld [vmem:[%s1985_s1 + $0x20] sm:$0xff] (!%p276_p2)   ;;  %v1628_v21 = vld [vmem:[%s1985_s1 + $0x28] sm:$0xff] (!%p276_p2)  }
   0xb   : > { %1459 = vmatpush3.bf16.msra.mxu0 (!%p276_p2), %v1612_v5  ;;  %v1621_v14 = vld [vmem:[%s1985_s1 + $0xd8] sm:$0xff] (!%p276_p2)   ;;  %v1625_v18 = vld [vmem:[%s1985_s1 + $0xe0] sm:$0xff] (!%p276_p2)   ;;  %v1629_v22 = vld [vmem:[%s1985_s1 + $0xe8] sm:$0xff] (!%p276_p2)  }
   0xc   : > { %1460 = vmatprep.subr.bf16.mxu0 (!%p276_p2), %v1615_v8  ;;  %v1622_v15 = vld [vmem:[%s1985_s1 + $0x98] sm:$0xff] (!%p276_p2)   ;;  %v1626_v19 = vld [vmem:[%s1985_s1 + $0xa0] sm:$0xff] (!%p276_p2)   ;;  %v1630_v23 = vld [vmem:[%s1985_s1 + $0xa8] sm:$0xff] (!%p276_p2)  }
   0xd   : > { %1487 = vmatpush3.bf16.msra.mxu1 %v1614_v7  ;;  %s1994_s15 = smov (!%p316_p3, %s1366_s15), 7  ;;  %v1631_v24 = vld [vmem:[%s1985_s1 + $0x70] sm:$0xff]   ;;  %v1635_v28 = vld [vmem:[%s1985_s1 + $0x78] sm:$0xff]   ;;  %v1642_v34 = vld [vmem:[%s1985_s1 + $0x140] sm:$0xff]  }
   0xe   : > { %1488 = vmatprep.subr.bf16.mxu1 %v1617_v10  ;;  %s1597_s18 = smul.u32 28, %s1994_s15  ;;  %v1632_v25 = vld [vmem:[%s1985_s1 + $0x30] sm:$0xff]   ;;  %v1636_v29 = vld [vmem:[%s1985_s1 + $0x38] sm:$0xff]   ;;  %v1646_v37 = vld [vmem:[%s1985_s1 + $0x100] sm:$0xff]   ;;  %s1369_s23 = sshll.u32 %s1994_s15, 3 }
   0xf   : > { %1461 = vmatpush3.bf16.msra.mxu0 %v1616_v9  ;;  %v1633_v26 = vld [vmem:[%s1985_s1 + $0xf0] sm:$0xff]   ;;  %v1637_v30 = vld [vmem:[%s1985_s1 + $0xf8] sm:$0xff]   ;;  %v1647_v38 = vld [vmem:[%s1985_s1 + $0x148] sm:$0xff]   ;;  %s326_s25 = scalar_lea.vmem %s1991_s7, %s1369_s23  ;;  %s332_s9 = scalar_lea.vmem %s1992_s8, %s1369_s23 }
  0x10   : > { %1462 = vmatprep.subr.bf16.mxu0 %v1619_v12  ;;  %v1634_v27 = vld [vmem:[%s1985_s1 + $0xb0] sm:$0xff]   ;;  %s1853_s30 = scalar_lea.vmem %s1984_s0, %s1597_s18  ;;  %v1641_v33 = vld [vmem:[%s1985_s1 + $0xb8] sm:$0xff]   ;;  %v1648_v39 = vld [vmem:[%s1985_s1 + $0x180] sm:$0xff]  }
  0x11   : > { %1489 = vmatpush3.bf16.msra.mxu1 %v1618_v11  ;;  %v1638_v31 = vld [vmem:[%s1853_s30] ss:$28 sps:$4 sm:$0xff]   ;;  %v1643_v35 = vld [vmem:[%s1853_s30 + $0x8] ss:$28 sps:$4 sm:$0xff]   ;;  %v1650_v41 = vld [vmem:[%s1985_s1 + $0x150] sm:$0xff]  }
  0x12   : > { %1490 = vmatprep.subr.bf16.mxu1 %v1621_v14  ;;  %v1640_v32 = vld [vmem:[%s1853_s30 + $0x4] ss:$28 sps:$4 sm:$0xff]   ;;  %v1645_v36 = vld [vmem:[%s1853_s30 + $0xc] ss:$28 sps:$4 sm:$0xff]   ;;  %v1652_v43 = vld [vmem:[%s1985_s1 + $0x110] sm:$0xff]  }
  0x13   : > { %1463 = vmatpush3.bf16.msra.mxu0 %v1620_v13  ;;  %910 = vmatprep.mubr.bf16.mxu0 %v1640_v32  ;;  %v1649_v40 = vld [vmem:[%s1985_s1 + $0x108] sm:$0xff]   ;;  %v1653_v44 = vld [vmem:[%s1985_s1 + $0x158] sm:$0xff]   ;;  %v1654_v45 = vld [vmem:[%s1985_s1 + $0x190] sm:$0xff]  }
  0x14   : > { %1464 = vmatprep.subr.bf16.mxu0 %v1623_v16  ;;  %959 = vmatprep.mubr.bf16.mxu1 %v1645_v36  ;;  %v1651_v42 = vld [vmem:[%s1985_s1 + $0x188] sm:$0xff]   ;;  %v1655_v46 = vld [vmem:[%s1985_s1 + $0x118] sm:$0xff]   ;;  %v1656_v47 = vld [vmem:[%s1985_s1 + $0x160] sm:$0xff]  }
  0x15   : > { %1491 = vmatpush3.bf16.msra.mxu1 %v1622_v15  ;;  %v1657_v48 = vld [vmem:[%s1985_s1 + $0x198] sm:$0xff]   ;;  %v1658_v49 = vld [vmem:[%s1985_s1 + $0x120] sm:$0xff]   ;;  %v1661_v51 = vld [vmem:[%s1985_s1 + $0x168] sm:$0xff]  }
  0x16   : > { %1492 = vmatprep.subr.bf16.mxu1 %v1625_v18  ;;  %v1659_v50 = vld [vmem:[%s1853_s30 + $0x3c] ss:$28 sps:$4 sm:$0xff]   ;;  %v1662_v52 = vld [vmem:[%s1985_s1 + $0x1a0] sm:$0xff]   ;;  %v1664_v54 = vld [vmem:[%s1985_s1 + $0x128] sm:$0xff]  }
  0x17   : > { %1465 = vmatpush3.bf16.msra.mxu0 %v1624_v17  ;;  %v1663_v53 = vld [vmem:[%s1853_s30 + $0x38] ss:$28 sps:$4 sm:$0xff]   ;;  %v1665_v55 = vld [vmem:[%s1853_s30 + $0x44] ss:$28 sps:$4 sm:$0xff]   ;;  %v1669_v58 = vld [vmem:[%s1985_s1 + $0x1a8] sm:$0xff]  }
  0x18   : > { %1466 = vmatprep.subr.bf16.mxu0 %v1627_v20  ;;  %v1667_v56 = vld [vmem:[%s1853_s30 + $0x40] ss:$28 sps:$4 sm:$0xff]   ;;  %v1668_v57 = vld [vmem:[%s1985_s1 + $0x170] sm:$0xff]   ;;  %v1680_v3 = vld [vmem:[%s1853_s30 + $0x4c] ss:$28 sps:$4 sm:$0xff]  }
  0x19   : > { %1493 = vmatpush3.bf16.msra.mxu1 %v1626_v19  ;;  %v1670_v59 = vld [vmem:[%s1985_s1 + $0x130] sm:$0xff]   ;;  %v1671_v60 = vld [vmem:[%s1985_s1 + $0x178] sm:$0xff]   ;;  %v1682_v5 = vld [vmem:[%s1853_s30 + $0x48] ss:$28 sps:$4 sm:$0xff]  }
  0x1a   : > { %1494 = vmatprep.subr.bf16.mxu1 %v1629_v22  ;;  %v1672_v61 = vld [vmem:[%s1985_s1 + $0x1b0] sm:$0xff]   ;;  %v1673_v62 = vld [vmem:[%s1985_s1 + $0x138] sm:$0xff]   ;;  %v1683_v6 = vld [vmem:[%s1987_s3] sm:$0xff]  }
  0x1b   : > { %1467 = vmatpush3.bf16.msra.mxu0 %v1628_v21  ;;  %v1676_v63 = vld [vmem:[%s1853_s30 + $0x14] ss:$28 sps:$4 sm:$0xff]   ;;  %v1677_v0 = vld [vmem:[%s1985_s1 + $0x1b8] sm:$0xff]   ;;  %v1684_v7 = vld [vmem:[%s1987_s3 + $0x8] sm:$0xff]  }
  0x1c   : > { %1468 = vmatprep.subr.bf16.mxu0 %v1631_v24  ;;  %v1678_v1 = vld [vmem:[%s1853_s30 + $0x18] ss:$28 sps:$4 sm:$0xff]   ;;  %v1674_v2 = vld [vmem:[%s1853_s30 + $0x10] ss:$28 sps:$4 sm:$0xff]   ;;  %v1372_v11 = vld [vmem:[%s1986_s2] ss:$0 sm:$0xff] }
  0x1d   : > { %1495 = vmatpush3.bf16.msra.mxu1 %v1630_v23  ;;  %v1679_v4 = vld [vmem:[%s1853_s30 + $0x50] ss:$28 sps:$4 sm:$0xff]   ;;  %v1686_v9 = vld [vmem:[%s1987_s3 + $0x18] sm:$0xff]  }
  0x1e   : > { %1496 = vmatprep.subr.bf16.mxu1 %v1633_v26  ;;  %v1685_v8 = vld [vmem:[%s1987_s3 + $0x10] sm:$0xff]  }
  0x1f   : > { %1469 = vmatpush3.bf16.msra.mxu0 %v1632_v25 }
  0x20   : > { %1470 = vmatprep.subr.bf16.mxu0 %v1635_v28 }
  0x21   : > { %1497 = vmatpush3.bf16.msra.mxu1 %v1634_v27 }
  0x22   : > { %1498 = vmatprep.subr.bf16.mxu1 %v1637_v30 }
  0x23   : > { %1471 = vmatpush3.bf16.msra.mxu0 %v1636_v29 }
  0x24   : > { %1512 = vmatprep.subr.bf16.mxu0 %v1642_v34 }
  0x25   : > { %1499 = vmatpush3.bf16.msra.mxu1 %v1641_v33 }
  0x26   : > { %911 = vmatmul.mubr.bf16.vlgmr.msra.gmra.mrb[0].mxu0 %v1638_v31  ;;  %1559 = vmatprep.subr.bf16.mxu1 %v1648_v39 }
  0x27   : > { %1513 = vmatpush3.bf16.msra.mxu0 %v1646_v37  ;;  %918 = vmatprep.mubr.bf16.mxu0 %v1659_v50 }
  0x28   : > { %960 = vmatmul.mubr.bf16.vlgmr.msra.gmra.mrb[0].mxu1 %v1643_v35  ;;  %1514 = vmatprep.subr.bf16.mxu0 %v1647_v38 }
  0x29   : > { %1560 = vmatpush3.bf16.msra.mxu1 %v1648_v39  ;;  %967 = vmatprep.mubr.bf16.mxu1 %v1665_v55 }
  0x2a   : > { %1561 = vmatprep.subr.bf16.mxu1 %v1651_v42 }
  0x2b   : > { %1515 = vmatpush3.bf16.msra.mxu0 %v1649_v40 }
  0x2c   : > { %1516 = vmatprep.subr.bf16.mxu0 %v1650_v41 }
  0x2d   : > { %1562 = vmatpush3.bf16.msra.mxu1 %v1651_v42 }
  0x2e   : > { %1563 = vmatprep.subr.bf16.mxu1 %v1654_v45  ;;  %919 = vmatmul.mubr.bf16.gmra.mrb[4].mxu0 %v1663_v53 }
  0x2f   : > { %1517 = vmatpush3.bf16.msra.mxu0 %v1652_v43  ;;  %1008 = vmatprep.mubr.bf16.mxu0 %v1676_v63 }
  0x30   : > { %1518 = vmatprep.subr.bf16.mxu0 %v1653_v44  ;;  %968 = vmatmul.mubr.bf16.gmra.mrb[4].mxu1 %v1667_v56 }
  0x31   : > { %1564 = vmatpush3.bf16.msra.mxu1 %v1654_v45  ;;  %1575 = vmatprep.mubr.bf16.mxu1 %v1678_v1 }
  0x32   : > { %1565 = vmatprep.subr.bf16.mxu1 %v1657_v48 }
  0x33   : > { %1519 = vmatpush3.bf16.msra.mxu0 %v1655_v46 }
  0x34   : > { %1520 = vmatprep.subr.bf16.mxu0 %v1656_v47 }
  0x35   : > { %1566 = vmatpush3.bf16.msra.mxu1 %v1657_v48 }
  0x36   : > { %1567 = vmatprep.subr.bf16.mxu1 %v1662_v52 }
  0x37   : > { %1521 = vmatpush3.bf16.msra.mxu0 %v1658_v49 }
  0x38   : > { %1522 = vmatprep.subr.bf16.mxu0 %v1661_v51 }
  0x39   : > { %1568 = vmatpush3.bf16.msra.mxu1 %v1662_v52 }
  0x3a   : > { %1569 = vmatprep.subr.bf16.mxu1 %v1669_v58 }
  0x3b   : > { %1523 = vmatpush3.bf16.msra.mxu0 %v1664_v54 }
  0x3c   : > { %1524 = vmatprep.subr.bf16.mxu0 %v1668_v57 }
  0x3d   : > { %1570 = vmatpush3.bf16.msra.mxu1 %v1669_v58 }
  0x3e   : > { %1571 = vmatprep.subr.bf16.mxu1 %v1672_v61 }
  0x3f   : > { %1525 = vmatpush3.bf16.msra.mxu0 %v1670_v59 }
  0x40   : > { %1526 = vmatprep.subr.bf16.mxu0 %v1671_v60 }
  0x41   : > { %1572 = vmatpush3.bf16.msra.mxu1 %v1672_v61 }
  0x42   : > { %1573 = vmatprep.subr.bf16.mxu1 %v1677_v0 }
  0x43   : > { %1527 = vmatpush3.bf16.msra.mxu0 %v1673_v62 }
  0x44   : > { %1579 = vmatprep.subr.bf16.mxu0 %v1683_v6 }
  0x45   : > { %1574 = vmatpush3.bf16.msra.mxu1 %v1677_v0 }
  0x46   : > { %1009 = vmatmul.mubr.bf16.vlgmr.msra.gmra.mrb[8].mxu0 %v1674_v2 }
  0x47   : > { %1016 = vmatprep.mubr.bf16.mxu0 %v1680_v3  ;;  %1580 = vmatpush3.bf16.msra.mxu0 %v1683_v6 }
  0x48   : > { %1576 = vmatmul.mubr.bf16.vlgmr.msra.gmra.mrb[8].mxu1 %v1679_v4  ;;  %1581 = vmatprep.subr.bf16.mxu0 %v1684_v7 }
  0x4b   : > { %1582 = vmatpush3.bf16.msra.mxu0 %v1684_v7 }
  0x4c   : > { %1583 = vmatprep.subr.bf16.mxu0 %v1685_v8 }
  0x4e   : > { %1017 = vmatmul.mubr.bf16.gmra.mrb[12].mxu0 %v1682_v5 }
  0x4f   : > { %1584 = vmatpush3.bf16.msra.mxu0 %v1685_v8 }
  0x50   : > { %1585 = vmatprep.subr.bf16.mxu0 %v1686_v9 }
  0x53   : > { %1586 = vmatpush3.bf16.msra.mxu0 %v1686_v9  ;;  %v1687_v9 = vld [vmem:[%s1989_s5] sm:$0xff]  }
  0x54   : > { %1591 = vmatprep.subr.bf16.mxu1 %v1687_v9 }
  0x55   : > { %1592 = vmatpush3.bf16.msra.mxu1 %v1687_v9 }
  0xf9   : > { %v1472_v10 = vpop.f32.mrb[0].mxu0 }
  0xfa   : > { %v1473_v12 = vpop.f32.mrb[1].mxu0 }
  0xfb   : > { %v1474_v13 = vadd.f32 %v1473_v12, %v1472_v10  ;;  %v1475_v14 = vpop.f32.mrb[2].mxu0  ;;  %v1500_v15 = vpop.f32.mrb[0].mxu1  ;;  %v1443_v10 = vld [vmem:[%s1988_s4] ss:$0 sm:$0xff] }
  0xfc   : > { %v1476_v16 = vpop.f32.mrb[3].mxu0  ;;  %v1501_v19 = vpop.f32.mrb[1].mxu1 }
  0xfd   : > { %v913_v17 = vadd.f32 %v1474_v13, %v1372_v11  ;;  %v1477_v18 = vadd.f32 %v1476_v16, %v1475_v14  ;;  %v1502_v20 = vadd.f32 %v1501_v19, %v1500_v15  ;;  %v1503_v21 = vpop.f32.mrb[2].mxu1 }
  0xfe   : > { %v1504_v23 = vpop.f32.mrb[3].mxu1 }
  0xff   : > { %v916_v22 = vadd.f32 %v1477_v18, %v1372_v11  ;;  %v962_v24 = vadd.f32 %v1502_v20, %v913_v17  ;;  %v1505_v25 = vadd.f32 %v1504_v23, %v1503_v21 }
 0x101   : > { %v965_v26 = vadd.f32 %v1505_v25, %v916_v22  ;;  %v1478_v27 = vpop.f32.mrb[4].mxu0  ;;  %v1450_v25 = vld [vmem:[%s1990_s6] ss:$0 sm:$0xff] }
 0x102   : > { %v1479_v28 = vpop.f32.mrb[5].mxu0 }
 0x103   : > { %v1480_v29 = vadd.f32 %v1479_v28, %v1478_v27  ;;  %v1481_v30 = vpop.f32.mrb[6].mxu0  ;;  %v1506_v31 = vpop.f32.mrb[4].mxu1 }
 0x104   : > { %v1482_v32 = vpop.f32.mrb[7].mxu0  ;;  %v1507_v35 = vpop.f32.mrb[5].mxu1 }
 0x105   : > { %v921_v33 = vadd.f32 %v1480_v29, %v1372_v11  ;;  %v1483_v34 = vadd.f32 %v1482_v32, %v1481_v30  ;;  %v1508_v36 = vadd.f32 %v1507_v35, %v1506_v31  ;;  %v1509_v37 = vpop.f32.mrb[6].mxu1 }
 0x106   : > { %v1510_v39 = vpop.f32.mrb[7].mxu1 }
 0x107   : > { %v924_v38 = vadd.f32 %v1483_v34, %v1372_v11  ;;  %v970_v40 = vadd.f32 %v1508_v36, %v921_v33  ;;  %v1511_v41 = vadd.f32 %v1510_v39, %v1509_v37 }
 0x109   : > { %v973_v42 = vadd.f32 %v1511_v41, %v924_v38 }
 0x119   : > { %v1528_v43 = vpop.f32.mrb[8].mxu0 }
 0x11a   : > { %v1529_v44 = vpop.f32.mrb[9].mxu0 }
 0x11b   : > { %v1530_v45 = vadd.f32 %v1529_v44, %v1528_v43  ;;  %v1531_v46 = vpop.f32.mrb[10].mxu0  ;;  %v1577_v48 = vpop.f32.mrb[8].mxu1 }
 0x11c   : > { %v1532_v47 = vpop.f32.mrb[11].mxu0  ;;  %v1059_v51 = vpop.f32.mrb[9].mxu1 }
 0x11d   : > { %v1533_v49 = vadd.f32 %v1532_v47, %v1531_v46  ;;  %v1011_v50 = vadd.f32 %v1530_v45, %v962_v24  ;;  %v1578_v52 = vpop.f32.mrb[10].mxu1  ;;  %v1262_v45 = vld [vmem:[%s326_s25 + $0x10] sm:$0xff]  ;;  %v1263_v47 = vld [vmem:[%s326_s25 + $0x18] sm:$0xff] }
 0x11e   : > { %v1062_v55 = vpop.f32.mrb[11].mxu1 }
 0x11f   : > { %v1060_v53 = vadd.f32 %v1059_v51, %v1011_v50  ;;  %v1014_v54 = vadd.f32 %v1533_v49, %v965_v26 }
 0x121   : > { %v1063_v56 = vadd.f32 %v1062_v55, %v1014_v54  ;;  %v1534_v57 = vpop.f32.mrb[12].mxu0  ;;  %v1074_v59 = vmax.f32 %v1060_v53, 0.0 }
 0x122   : > { %v1535_v58 = vpop.f32.mrb[13].mxu0 }
 0x123   : > { %v1075_v60 = vmax.f32 %v1063_v56, 0.0  ;;  %v1536_v61 = vadd.f32 %v1535_v58, %v1534_v57  ;;  %v1537_v62 = vpop.f32.mrb[14].mxu0 }
 0x124   : > { %v1538_v63 = vpop.f32.mrb[15].mxu0 }
 0x125   : > { %v1078_v0 = vpack.c.bf16 %v1075_v60, %v1074_v59  ;;  %v1019_v1 = vadd.f32 %v1536_v61, %v970_v40  ;;  %v1539_v2 = vadd.f32 %v1538_v63, %v1537_v62 }
 0x127   : > { %v1068_v3 = vadd.f32 %v1577_v48, %v1019_v1  ;;  %v1022_v4 = vadd.f32 %v1539_v2, %v973_v42  ;;  %1587 = vmatprep.mubr.msk.bf16.mxu0 %vm1119_vm0, %v1078_v0  ;;  %v1260_v42 = vld [vmem:[%s326_s25] sm:$0xff]  ;;  %v1261_v48 = vld [vmem:[%s326_s25 + $0x8] sm:$0xff] }
 0x129   : > { %v1071_v5 = vadd.f32 %v1578_v52, %v1022_v4  ;;  %v1076_v6 = vmax.f32 %v1068_v3, 0.0 }
 0x12b   : > { %v1077_v7 = vmax.f32 %v1071_v5, 0.0 }
 0x12d   : > { %v1079_v8 = vpack.c.bf16 %v1077_v7, %v1076_v6 }
 0x12f   : > { %1588 = vmatmul.mubr.msk.bf16.vlgmr.msra.gmra.mrb[16].mxu0 %vm1119_vm0, %v1079_v8 }
 0x202   : > { %v1589_v11 = vpop.f32.mrb[16].mxu0 }
 0x203   : > { %v1169_v12 = vadd.f32 %v1589_v11, %v1443_v10  ;;  %v1160_v13 = vpop.f32.mrb[17].mxu0 }
 0x204   : > { %v1161_v14 = vadd.f32 %v1443_v10, %v1160_v13  ;;  %v1590_v15 = vpop.f32.mrb[18].mxu0 }
 0x205   : > { %v1172_v16 = vadd.f32 %v1590_v15, %v1443_v10  ;;  %v1163_v17 = vpop.f32.mrb[19].mxu0  ;;  %v1177_v19 = vmax.f32 %v1169_v12, 0.0 }
 0x206   : > { %v1164_v18 = vadd.f32 %v1443_v10, %v1163_v17  ;;  %v1175_v21 = vmax.f32 %v1161_v14, 0.0 }
 0x207   : > { %v1178_v20 = vmax.f32 %v1172_v16, 0.0 }
 0x208   : > { %v1176_v22 = vmax.f32 %v1164_v18, 0.0 }
 0x209   : > { %v1180_v23 = vpack.c.bf16 %v1178_v20, %v1177_v19 }
 0x20a   : > { %v1179_v24 = vpack.c.bf16 %v1176_v22, %v1175_v21 }
 0x20c   : > { %1593 = vmatprep.mubr.msk.bf16.mxu1 %vm1196_vm1, %v1179_v24 }
 0x20d   : > { %1594 = vmatmul.mubr.msk.bf16.vlgmr.msra.gmra.mrb[12].mxu1 %vm1196_vm1, %v1180_v23 }
 0x2e0   : > { %v1595_v26 = vpop.f32.mrb[12].mxu1 }
 0x2e1   : > { %v1246_v27 = vadd.f32 %v1595_v26, %v1450_v25  ;;  %v1237_v28 = vpop.f32.mrb[13].mxu1 }
 0x2e2   : > { %v1238_v29 = vadd.f32 %v1450_v25, %v1237_v28  ;;  %v1596_v30 = vpop.f32.mrb[14].mxu1 }
 0x2e3   : > { %v1256_v31 = vmul.f32 1.442695, %v1246_v27  ;;  %v1249_v32 = vadd.f32 %v1596_v30, %v1450_v25  ;;  %v1240_v33 = vpop.f32.mrb[15].mxu1 }
 0x2e4   : > { %v1252_v34 = vmul.f32 1.442695, %v1238_v29  ;;  %v1241_v35 = vadd.f32 %v1450_v25, %v1240_v33 }
 0x2e5   : > { %1688 = vpow2.f32 %v1256_v31  ;;  %v1258_v36 = vmul.f32 1.442695, %v1249_v32 }
 0x2e6   : > { %1690 = vpow2.f32 %v1252_v34  ;;  %v1254_v37 = vmul.f32 1.442695, %v1241_v35 }
 0x2e7   : > { %1692 = vpow2.f32 %v1258_v36 }
 0x2e8   : > { %1694 = vpow2.f32 %v1254_v37 }
 0x2ef   : > { %v1689_v38 = vpop.eup %1688 }
 0x2f0   : > { %v1691_v39 = vpop.eup %1690  ;;  %1272 = vrot.lane.b32.xlu1 %v1689_v38, %s1704_s22 }
 0x2f1   : > { %1268 = vrot.lane.b32.xlu0 %v1691_v39, %s1704_s22  ;;  %v1693_v40 = vpop.eup %1692 }
 0x2f2   : > { %v1695_v41 = vpop.eup %1694 }
 0x2f4   : > { %1274 = vrot.lane.b32.xlu1 %v1693_v40, %s1704_s22 }
 0x2f5   : > { %1270 = vrot.lane.b32.xlu0 %v1695_v41, %s1704_s22 }
 0x362   : > { %v1273_v43 = vpop.permute.xlu1 %1272 }
 0x363   : > { %v1269_v44 = vpop.permute.xlu0 %1268  ;;  %v1282_v51 = vmul.f32 %v1273_v43, %v1262_v45 }
 0x364   : > { %v1280_v46 = vmul.f32 %v1269_v44, %v1260_v42 }
 0x365   : > { %v1286_v56 = vadd.f32 %v1282_v51, %v1246_v27 }
 0x366   : > { %v1284_v49 = vadd.f32 %v1280_v46, %v1238_v29  ;;  %v1275_v50 = vpop.permute.xlu1 %1274 }
 0x367   : > { %v1271_v52 = vpop.permute.xlu0 %1270  ;;  %v1283_v53 = vmul.f32 %v1275_v50, %v1263_v47  ;;  %1291 = vst.msk [vmem:[%s332_s9 + $0x10] sm:$0xff] %vm1288_vm2, %v1286_v56 }
 0x368   : > { %1289 = vst.msk [vmem:[%s332_s9] sm:$0xff] %vm1288_vm2, %v1284_v49  ;;  %v1281_v54 = vmul.f32 %v1271_v52, %v1261_v48 }
 0x369   : > { %v1287_v57 = vadd.f32 %v1283_v53, %v1249_v32 }
 0x36a   : > { %v1285_v55 = vadd.f32 %v1281_v54, %v1241_v35 }
 0x36b   : > { %1292 = vst.msk [vmem:[%s332_s9 + $0x18] sm:$0xff] %vm1288_vm2, %v1287_v57 }
 0x36c   : > { %1290 = vst.msk [vmem:[%s332_s9 + $0x8] sm:$0xff] %vm1288_vm2, %v1285_v55 }
 0x36d PF: > { %s18_s27 = sadd.s32 1, %s1702_s27  }
 0x36e   : > { %p15_p4 = scmp.ge.s32.totalorder %s18_s27, 4  }
 0x370   :  { %17 = sbr.rel (!%p15_p4) target bundleno = 1 (0x1), region = 85 }

</bundles_post_ra>
